<compile_context>
chip_gen: v5e
topology: v5e:2x2
jax: 0.10.0
libtpu: 0.0.40
codegen_flags: <defaults>
</compile_context>

<pallas_src>
import functools

import jax
import jax.numpy as jnp
from jax import lax
from jax.experimental import pallas as pl
from jax.experimental.pallas import tpu as pltpu

LANE = 128                 # vreg lane width
SUBLANES = 8               # f32 sublane count -> (8, 128) accumulator tile
MAX_BLOCK_ROWS = 8192      # 8192 x 128 f32 = 4 MiB per input tile
VMEM_LIMIT_BYTES = 48 * 1024 * 1024   # 2 inputs x 2 buffers x 4 MiB = 16 MiB + headroom


def _round_up(v: int, m: int) -> int:
    return ((v + m - 1) // m) * m


def _min_sublanes(dtype) -> int:
    # Minimum second-minor tile multiple: 8 for 4-byte, 16 for 2-byte, 32 for 1-byte.
    itemsize = max(1, jnp.dtype(dtype).itemsize)
    return max(SUBLANES, 32 // itemsize)


def _num_shards_for_device() -> int:
    # Only v7x has 2 TensorCores per chip; everywhere else sharding is pure overhead.
    try:
        kind = jax.devices()[0].device_kind.lower()
    except Exception:
        return 1
    return 2 if "7" in kind else 1


def _make_kernel(eps: float, kernel_n: int, block_rows: int, inner_steps: int,
                 full_blocks: int):
    """kernel_n: number of (128-aligned) elements covered by the 2-D input slab."""
    block_elems = block_rows * LANE
    eps = float(eps)  # folded into the jaxpr as a literal (no captured constant)

    def kernel(x_ref, y_ref, out_ref):
        s = pl.program_id(0)   # shard axis (CORE_PARALLEL on v7x, size 1 elsewhere)
        i = pl.program_id(1)   # reduction axis ("arbitrary")

        @pl.when(i == 0)
        def _init():
            out_ref[...] = jnp.zeros_like(out_ref)

        # Unclamped global block index (int32 math; wrapper asserts n is small enough).
        blk = s * inner_steps + i

        # Fast path: block fully inside the valid range -> no mask ops at all.
        @pl.when(blk < full_blocks)
        def _interior():
            diff = x_ref[...].astype(jnp.float32) - y_ref[...].astype(jnp.float32)
            charb = jnp.sqrt(diff * diff + eps)
            # (block_rows,128) -> (block_rows//8, 8, 128); sum over axis 0 is pure
            # VPU vreg adds into the resident (8,128) accumulator.
            out_ref[...] += jnp.sum(
                charb.reshape(block_rows // SUBLANES, SUBLANES, LANE), axis=0)

        # Boundary / clamped-duplicate blocks: mask out-of-range elements.
        @pl.when(blk >= full_blocks)
        def _tail():
            rem = kernel_n - blk * block_elems   # <= 0 for clamped duplicate blocks
            row_ids = lax.broadcasted_iota(jnp.int32, (block_rows, LANE), 0)
            lane_ids = lax.broadcasted_iota(jnp.int32, (block_rows, LANE), 1)
            valid = (row_ids * LANE + lane_ids) < rem
            diff = x_ref[...].astype(jnp.float32) - y_ref[...].astype(jnp.float32)
            charb = jnp.where(valid, jnp.sqrt(diff * diff + eps), 0.0)
            out_ref[...] += jnp.sum(
                charb.reshape(block_rows // SUBLANES, SUBLANES, LANE), axis=0)

    return kernel


@functools.partial(jax.jit, static_argnames=("eps",))
def charbonnier_loss(x: jax.Array, y: jax.Array, eps: float = 1e-9) -> jax.Array:
    assert x.shape == y.shape, "x and y must have the same shape"
    n = int(x.size)
    assert n > 0
    # int32 index math inside the kernel; keep well below 2^31 elements.
    assert n < 2**31 - 2 * MAX_BLOCK_ROWS * LANE, "input too large for int32 indexing"

    xf = x.reshape(-1)
    yf = y.reshape(-1)

    n_aligned = (n // LANE) * LANE
    rows = n_aligned // LANE

    # <128-element remainder: plain JAX, folded into the final sum (no padded copy).
    if n_aligned < n:
        dx = xf[n_aligned:].astype(jnp.float32) - yf[n_aligned:].astype(jnp.float32)
        tail_sum = jnp.sum(jnp.sqrt(dx * dx + jnp.float32(eps)))
    else:
        tail_sum = jnp.float32(0.0)

    if rows == 0:
        return tail_sum / jnp.float32(n)

    if n_aligned < n:
        x2 = lax.slice(xf, (0,), (n_aligned,)).reshape(rows, LANE)
        y2 = lax.slice(yf, (0,), (n_aligned,)).reshape(rows, LANE)
    else:
        x2 = xf.reshape(rows, LANE)
        y2 = yf.reshape(rows, LANE)

    sub = _min_sublanes(x.dtype)
    block_rows = min(MAX_BLOCK_ROWS, _round_up(rows, sub))
    block_elems = block_rows * LANE
    num_blocks = -(-rows // block_rows)
    full_blocks = n_aligned // block_elems          # blocks with zero masking needed

    num_shards = min(_num_shards_for_device(), num_blocks)
    inner_steps = -(-num_blocks // num_shards)

    def in_index_map(s, i):
        blk = s * inner_steps + i
        # Clamp so duplicated trailing steps re-read a valid block; their contribution
        # is masked to zero inside the kernel (mask uses the unclamped index).
        return (jnp.minimum(blk, num_blocks - 1), 0)

    if num_shards > 1:
        # v7x: actually split the shard axis across the two TensorCores.
        dim_sem = (pltpu.CORE_PARALLEL, pltpu.ARBITRARY)
    else:
        dim_sem = (pltpu.ARBITRARY, pltpu.ARBITRARY)

    kernel = _make_kernel(eps, n_aligned, block_rows, inner_steps, full_blocks)

    partials = pl.pallas_call(
        kernel,
        out_shape=jax.ShapeDtypeStruct((num_shards * SUBLANES, LANE), jnp.float32),
        grid_spec=pltpu.PrefetchScalarGridSpec(
            num_scalar_prefetch=0,
            grid=(num_shards, inner_steps),
            in_specs=[
                pl.BlockSpec((block_rows, LANE), in_index_map),
                pl.BlockSpec((block_rows, LANE), in_index_map),
            ],
            out_specs=pl.BlockSpec((SUBLANES, LANE), lambda s, i: (s, 0)),
        ),
        compiler_params=pltpu.CompilerParams(
            dimension_semantics=dim_sem,
            vmem_limit_bytes=VMEM_LIMIT_BYTES,
        ),
    )(x2, y2)

    # Single final cross-lane reduce + mean, on at most 2*8*128 partials.
    return (jnp.sum(partials) + tail_sum) / jnp.float32(n)


if __name__ == "__main__":
    key = jax.random.PRNGKey(0)
    kx, ky = jax.random.split(key)

    # Small NCHW shapes consistent with the module's usage (128-aligned fast path).
    x = jax.random.normal(kx, (2, 4, 16, 16), dtype=jnp.float32)
    y = jax.random.normal(ky, (2, 4, 16, 16), dtype=jnp.float32)
    loss = charbonnier_loss(x, y, eps=1e-9)
    loss = jax.block_until_ready(loss)
    diff = x - y
    ref = jnp.mean(jnp.sqrt(diff * diff + 1e-9))
    assert jnp.allclose(loss, ref, rtol=1e-5, atol=1e-6), (loss, ref)

    # Non-128-multiple size: exercises the masked tail block + plain-JAX remainder.
    kx2, ky2 = jax.random.split(ky)
    x2 = jax.random.normal(kx2, (3, 4, 9, 11), dtype=jnp.float32)
    y2 = jax.random.normal(ky2, (3, 4, 9, 11), dtype=jnp.float32)
    loss2 = jax.block_until_ready(charbonnier_loss(x2, y2, eps=1e-9))
    d2 = x2 - y2
    ref2 = jnp.mean(jnp.sqrt(d2 * d2 + 1e-9))
    assert jnp.allclose(loss2, ref2, rtol=1e-5, atol=1e-6), (loss2, ref2)

    print("KERNEL_OK")
</pallas_src>

<mosaic_0001>
module attributes {stable_mosaic.version = 11 : i64} {
  func.func @kernel(%arg0: i32, %arg1: i32, %arg2: memref<16x128xf32, #tpu.memory_space<vmem>>, %arg3: memref<16x128xf32, #tpu.memory_space<vmem>>, %arg4: memref<8x128xf32, #tpu.memory_space<vmem>>) attributes {dimension_semantics = [#tpu.dimension_semantics<arbitrary>, #tpu.dimension_semantics<arbitrary>], iteration_bounds = array<i64: 1, 1>, scalar_prefetch = 0 : i64, scratch_operands = 0 : i64, tpu.core_type = #tpu.core_type<tc>, window_params = [{transform_indices = @transform_0, window_bounds = array<i64: 16, 128>}, {transform_indices = @transform_1, window_bounds = array<i64: 16, 128>}, {transform_indices = @transform_2, window_bounds = array<i64: 8, 128>}]} {
    %c0_i32 = arith.constant 0 : i32
    %0 = arith.cmpi eq, %arg1, %c0_i32 : i32
    %1 = arith.extui %0 : i1 to i32
    %c0_i32_0 = arith.constant 0 : i32
    %2 = arith.cmpi ne, %1, %c0_i32_0 : i32
    scf.if %2 {
      %cst = arith.constant 0.000000e+00 : f32
      %11 = vector.broadcast %cst : f32 to vector<8x128xf32>
      %c0 = arith.constant 0 : index
      %c0_5 = arith.constant 0 : index
      %12 = vector.load %arg4[%c0, %c0_5] : memref<8x128xf32, #tpu.memory_space<vmem>>, vector<8x128xf32>
      tpu.vector_store %arg4[%c0, %c0_5], %11 {strides = array<i32>} : memref<8x128xf32, #tpu.memory_space<vmem>>, vector<8x128xf32>,
    } else {
    }
    %c1_i32 = arith.constant 1 : i32
    %3 = arith.muli %arg0, %c1_i32 : i32
    %4 = arith.addi %3, %arg1 : i32
    %c1_i32_1 = arith.constant 1 : i32
    %5 = arith.cmpi slt, %4, %c1_i32_1 : i32
    %6 = arith.extui %5 : i1 to i32
    %c0_i32_2 = arith.constant 0 : i32
    %7 = arith.cmpi ne, %6, %c0_i32_2 : i32
    scf.if %7 {
      %c0 = arith.constant 0 : index
      %c0_5 = arith.constant 0 : index
      %11 = vector.load %arg2[%c0, %c0_5] : memref<16x128xf32, #tpu.memory_space<vmem>>, vector<16x128xf32>
      %c0_6 = arith.constant 0 : index
      %c0_7 = arith.constant 0 : index
      %12 = vector.load %arg3[%c0_6, %c0_7] : memref<16x128xf32, #tpu.memory_space<vmem>>, vector<16x128xf32>
      %13 = arith.subf %11, %12 : vector<16x128xf32>
      %14 = arith.mulf %13, %13 : vector<16x128xf32>
      %cst = arith.constant 9.99999971E-10 : f32
      %15 = vector.broadcast %cst : f32 to vector<16x128xf32>
      %16 = arith.addf %14, %15 : vector<16x128xf32>
      %17 = math.sqrt %16 : vector<16x128xf32>
      %c0_8 = arith.constant 0 : index
      %c0_9 = arith.constant 0 : index
      %18 = vector.load %arg4[%c0_8, %c0_9] : memref<8x128xf32, #tpu.memory_space<vmem>>, vector<8x128xf32>
      %19 = vector.shape_cast %17 : vector<16x128xf32> to vector<2x8x128xf32>
      %cst_10 = arith.constant dense<0.000000e+00> : vector<8x128xf32>
      %20 = vector.multi_reduction <add>, %19, %cst_10 [0] : vector<2x8x128xf32> to vector<8x128xf32>
      %21 = arith.addf %18, %20 : vector<8x128xf32>
      %c0_11 = arith.constant 0 : index
      %c0_12 = arith.constant 0 : index
      %22 = vector.load %arg4[%c0_11, %c0_12] : memref<8x128xf32, #tpu.memory_space<vmem>>, vector<8x128xf32>
      tpu.vector_store %arg4[%c0_11, %c0_12], %21 {strides = array<i32>} : memref<8x128xf32, #tpu.memory_space<vmem>>, vector<8x128xf32>,
    } else {
    }
    %c1_i32_3 = arith.constant 1 : i32
    %8 = arith.cmpi sge, %4, %c1_i32_3 : i32
    %9 = arith.extui %8 : i1 to i32
    %c0_i32_4 = arith.constant 0 : i32
    %10 = arith.cmpi ne, %9, %c0_i32_4 : i32
    scf.if %10 {
      %c2048_i32 = arith.constant 2048 : i32
      %11 = arith.muli %4, %c2048_i32 : i32
      %c2048_i32_5 = arith.constant 2048 : i32
      %12 = arith.subi %c2048_i32_5, %11 : i32
      %13 = tpu.iota {dimensions = array<i32: 0>} : vector<16x128xi32>
      %14 = tpu.iota {dimensions = array<i32: 1>} : vector<16x128xi32>
      %c128_i32 = arith.constant 128 : i32
      %15 = vector.broadcast %c128_i32 : i32 to vector<16x128xi32>
      %16 = arith.muli %13, %15 : vector<16x128xi32>
      %17 = arith.addi %16, %14 : vector<16x128xi32>
      %18 = vector.broadcast %12 : i32 to vector<16x128xi32>
      %19 = arith.cmpi slt, %17, %18 : vector<16x128xi32>
      %c0 = arith.constant 0 : index
      %c0_6 = arith.constant 0 : index
      %20 = vector.load %arg2[%c0, %c0_6] : memref<16x128xf32, #tpu.memory_space<vmem>>, vector<16x128xf32>
      %c0_7 = arith.constant 0 : index
      %c0_8 = arith.constant 0 : index
      %21 = vector.load %arg3[%c0_7, %c0_8] : memref<16x128xf32, #tpu.memory_space<vmem>>, vector<16x128xf32>
      %22 = arith.subf %20, %21 : vector<16x128xf32>
      %23 = arith.mulf %22, %22 : vector<16x128xf32>
      %cst = arith.constant 9.99999971E-10 : f32
      %24 = vector.broadcast %cst : f32 to vector<16x128xf32>
      %25 = arith.addf %23, %24 : vector<16x128xf32>
      %26 = math.sqrt %25 : vector<16x128xf32>
      %cst_9 = arith.constant 0.000000e+00 : f32
      %27 = vector.broadcast %cst_9 : f32 to vector<16x128xf32>
      %28 = arith.select %19, %26, %27 : vector<16x128xi1>, vector<16x128xf32>
      %c0_10 = arith.constant 0 : index
      %c0_11 = arith.constant 0 : index
      %29 = vector.load %arg4[%c0_10, %c0_11] : memref<8x128xf32, #tpu.memory_space<vmem>>, vector<8x128xf32>
      %30 = vector.shape_cast %28 : vector<16x128xf32> to vector<2x8x128xf32>
      %cst_12 = arith.constant dense<0.000000e+00> : vector<8x128xf32>
      %31 = vector.multi_reduction <add>, %30, %cst_12 [0] : vector<2x8x128xf32> to vector<8x128xf32>
      %32 = arith.addf %29, %31 : vector<8x128xf32>
      %c0_13 = arith.constant 0 : index
      %c0_14 = arith.constant 0 : index
      %33 = vector.load %arg4[%c0_13, %c0_14] : memref<8x128xf32, #tpu.memory_space<vmem>>, vector<8x128xf32>
      tpu.vector_store %arg4[%c0_13, %c0_14], %32 {strides = array<i32>} : memref<8x128xf32, #tpu.memory_space<vmem>>, vector<8x128xf32>,
    } else {
    }
    return
  }
  func.func @transform_0(%arg0: i32, %arg1: i32) -> (i32, i32) {
    %c1_i32 = arith.constant 1 : i32
    %0 = arith.muli %arg0, %c1_i32 : i32
    %1 = arith.addi %0, %arg1 : i32
    %c0_i32 = arith.constant 0 : i32
    %2 = arith.minsi %1, %c0_i32 : i32
    %c0_i32_0 = arith.constant 0 : i32
    %c0_i32_1 = arith.constant 0 : i32
    return %2, %c0_i32_0 : i32, i32
  }
  func.func @transform_1(%arg0: i32, %arg1: i32) -> (i32, i32) {
    %c1_i32 = arith.constant 1 : i32
    %0 = arith.muli %arg0, %c1_i32 : i32
    %1 = arith.addi %0, %arg1 : i32
    %c0_i32 = arith.constant 0 : i32
    %2 = arith.minsi %1, %c0_i32 : i32
    %c0_i32_0 = arith.constant 0 : i32
    %c0_i32_1 = arith.constant 0 : i32
    return %2, %c0_i32_0 : i32, i32
  }
  func.func @transform_2(%arg0: i32, %arg1: i32) -> (i32, i32) {
    %c0_i32 = arith.constant 0 : i32
    %c0_i32_0 = arith.constant 0 : i32
    return %arg0, %c0_i32 : i32, i32
  }
}

</mosaic_0001>

<bundles_post_ra>
// kernel: charbonnier_loss.1
= control target key start
LH: loop header
LB: loop body
LE: loop exit
PB: predicated region body
PF: predicated region fallthrough
CT: control target
= control target key end

     0   :  { %s232_s0 = inlined_call_operand.vmem [shape: f32[16,128], index: 0, kind: input, shape index: {}]   ;;  %s233_s1 = inlined_call_operand.vmem [shape: f32[16,128], index: 1, kind: input, shape index: {}]   ;;  %s234_s2 = inlined_call_operand.vmem [shape: f32[8,128], index: 2, kind: output, shape index: {}]  }
   0x1   :  { %v85_v0 = vld [vmem:[%s232_s0] sm:$0xff]  ;;  %v86_v1 = vld [vmem:[%s232_s0 + $0x8] sm:$0xff] }
   0x2   :  { %v87_v2 = vld [vmem:[%s233_s1] sm:$0xff]  ;;  %v88_v3 = vld [vmem:[%s233_s1 + $0x8] sm:$0xff] }
   0x3   :  { %v89_v4 = vsub.f32 %v85_v0, %v87_v2  ;;  %v90_v5 = vsub.f32 %v86_v1, %v88_v3 }
   0x5   :  { %v91_v6 = vmul.f32 %v89_v4, %v89_v4  ;;  %v92_v7 = vmul.f32 %v90_v5, %v90_v5 }
   0x7   :  { %v93_v8 = vadd.f32 1e-09, %v91_v6  ;;  %v94_v9 = vadd.f32 1e-09, %v92_v7 }
   0x9   :  { %198 = vrsqrt.f32 %v93_v8  ;;  %vm102_vm0 = vcmp.eq.f32.partialorder %v93_v8, inf  ;;  %v105_v21 = vand.u32 2147483648, %v93_v8  ;;  %vm104_vm1 = vcmp.eq.f32.partialorder %v93_v8, 0.0 }
   0xa   :  { %200 = vrsqrt.f32 %v94_v9  ;;  %vm114_vm2 = vcmp.eq.f32.partialorder %v94_v9, inf  ;;  %v117_v24 = vand.u32 2147483648, %v94_v9  ;;  %vm116_vm3 = vcmp.eq.f32.partialorder %v94_v9, 0.0 }
   0xf   :  { %v199_v10 = vpop.eup %198 }
  0x10   :  { %v201_v11 = vpop.eup %200  ;;  %v96_v12 = vmul.f32 %v199_v10, %v93_v8 }
  0x11   :  { %v108_v13 = vmul.f32 %v201_v11, %v94_v9 }
  0x12   :  { %v97_v14 = vmul.f32 %v199_v10, %v96_v12 }
  0x13   :  { %v109_v15 = vmul.f32 %v201_v11, %v108_v13 }
  0x14   :  { %v98_v16 = vmul.f32 0.5, %v97_v14 }
  0x15   :  { %v110_v17 = vmul.f32 0.5, %v109_v15 }
  0x16   :  { %v99_v18 = vsub.f32 1.5, %v98_v16 }
  0x17   :  { %v111_v19 = vsub.f32 1.5, %v110_v17 }
  0x18   :  { %v100_v20 = vmul.f32 %v199_v10, %v99_v18 }
  0x19   :  { %v112_v22 = vmul.f32 %v201_v11, %v111_v19 }
  0x1a   :  { %v101_v23 = vmul.f32 %v100_v20, %v93_v8 }
  0x1b   :  { %v113_v25 = vmul.f32 %v112_v22, %v94_v9 }
  0x1c   :  { %v103_v26 = vsel %vm102_vm0, %v93_v8, %v101_v23 }
  0x1d   :  { %v106_v27 = vsel %vm104_vm1, %v105_v21, %v103_v26  ;;  %v115_v28 = vsel %vm114_vm2, %v94_v9, %v113_v25 }
  0x1e   :  { %v118_v29 = vsel %vm116_vm3, %v117_v24, %v115_v28 }
  0x1f   :  { %v120_v30 = vadd.f32 %v118_v29, %v106_v27 }
  0x21   :  { %122 = vst [vmem:[%s234_s2] sm:$0xff] %v120_v30 }

</bundles_post_ra>
